<compile_context>
chip_gen: v6e
topology: v6e:2x2x1
jax: 0.10.0
libtpu: 0.0.40
codegen_flags: <defaults>
</compile_context>

<pallas_src>
import math

import jax
import jax.numpy as jnp
from jax.experimental import pallas as pl
from jax.experimental.pallas import tpu as pltpu


# ----------------------------------------------------------------------------
# Kernels
# ----------------------------------------------------------------------------
def _conv1x1_bias_relu_kernel(x_ref, w_ref, b_ref, o_ref):
    # x: (TM, Cin) bf16, w: (Cin, Cout) bf16 (BN scale pre-folded), b: (1, Cout) f32
    y = jnp.dot(x_ref[...], w_ref[...], preferred_element_type=jnp.float32)
    o_ref[...] = jnp.maximum(y + b_ref[...], 0.0).astype(o_ref.dtype)


def _conv1x1_bias_add_relu_kernel(x_ref, w_ref, b_ref, r_ref, o_ref):
    # same as above, plus a float32 residual add before the ReLU
    y = jnp.dot(x_ref[...], w_ref[...], preferred_element_type=jnp.float32)
    o_ref[...] = jnp.maximum(y + b_ref[...] + r_ref[...], 0.0).astype(o_ref.dtype)


def _branch_chain_kernel(x_ref, w_ref, b_ref, o_ref, pad_ref):
    """Fused hierarchical Res2Net branch stage for one batch element.

    x_ref  : (1, H, W, width*scale)  bf16  conv1/bn1/relu output
    w_ref  : (nums, 9*width, width)  bf16  3x3 weights (BN scale folded);
                                           row block k holds tap (dy,dx)=divmod(k,3)
    b_ref  : (nums, 1, width)        f32   folded BN bias per branch
    o_ref  : (1, H, W, width*scale)  bf16  concatenated branch outputs ("cat")
    pad_ref: (H+2, W+2, width)       bf16  zero-padded sp-input scratch
    """
    _, H, W, C = o_ref.shape
    nums, _, width = w_ref.shape
    scale = C // width

    # Pass the untouched last split straight through to its concat slice.
    if scale != 1:
        o_ref[0, :, :, nums * width:scale * width] = (
            x_ref[0, :, :, nums * width:scale * width])

    # Zero the padded scratch once; only the interior is rewritten below, so the
    # 1-pixel border stays zero and provides the conv padding (no host jnp.pad).
    pad_ref[...] = jnp.zeros_like(pad_ref)

    sp = None
    for i in range(nums):
        chunk = x_ref[0, :, :, i * width:(i + 1) * width].astype(jnp.float32)
        cur = chunk if i == 0 else sp + chunk          # sp kept on-chip (f32)
        pad_ref[1:H + 1, 1:W + 1, :] = cur.astype(pad_ref.dtype)

        # 9 static-offset taps accumulated in one f32 accumulator on the MXU.
        acc = jnp.zeros((H * W, width), jnp.float32)
        for k in range(9):
            dy, dx = divmod(k, 3)
            patch = pad_ref[dy:dy + H, dx:dx + W, :].reshape(H * W, width)
            acc = acc + jnp.dot(patch, w_ref[i, k * width:(k + 1) * width, :],
                                preferred_element_type=jnp.float32)

        sp = jnp.maximum(acc + b_ref[i], 0.0).reshape(H, W, width)
        # Write this branch directly into its channel slice of the concat buffer.
        o_ref[0, :, :, i * width:(i + 1) * width] = sp.astype(o_ref.dtype)


# ----------------------------------------------------------------------------
# Wrappers around pallas_call
# ----------------------------------------------------------------------------
def _pick_tile_m(M):
    """Largest M-tile (<=1024 rows) dividing M that still gives >=2 grid steps."""
    for t in (1024, 512, 256, 128, 64, 32, 16, 8):
        if M % t == 0 and M // t >= 2:
            return t
    return M


def conv1x1_bias_relu(x2d, w, b, out_dtype=jnp.bfloat16):
    M, Cin = x2d.shape
    Cout = w.shape[1]
    TM = _pick_tile_m(M)
    return pl.pallas_call(
        _conv1x1_bias_relu_kernel,
        out_shape=jax.ShapeDtypeStruct((M, Cout), out_dtype),
        grid_spec=pltpu.PrefetchScalarGridSpec(
            num_scalar_prefetch=0,
            grid=(M // TM,),
            in_specs=[
                pl.BlockSpec((TM, Cin), lambda i: (i, 0)),      # streamed tiles
                pl.BlockSpec((Cin, Cout), lambda i: (0, 0)),    # resident weight
                pl.BlockSpec((1, Cout), lambda i: (0, 0)),      # resident bias
            ],
            out_specs=pl.BlockSpec((TM, Cout), lambda i: (i, 0)),
        ),
        compiler_params=pltpu.CompilerParams(
            dimension_semantics=("parallel",)),
    )(x2d, w, b)


def conv1x1_bias_add_relu(x2d, w, b, res2d):
    M, Cin = x2d.shape
    Cout = w.shape[1]
    TM = _pick_tile_m(M)
    return pl.pallas_call(
        _conv1x1_bias_add_relu_kernel,
        out_shape=jax.ShapeDtypeStruct((M, Cout), jnp.float32),
        grid_spec=pltpu.PrefetchScalarGridSpec(
            num_scalar_prefetch=0,
            grid=(M // TM,),
            in_specs=[
                pl.BlockSpec((TM, Cin), lambda i: (i, 0)),      # streamed tiles
                pl.BlockSpec((Cin, Cout), lambda i: (0, 0)),    # resident weight
                pl.BlockSpec((1, Cout), lambda i: (0, 0)),      # resident bias
                pl.BlockSpec((TM, Cout), lambda i: (i, 0)),     # streamed residual
            ],
            out_specs=pl.BlockSpec((TM, Cout), lambda i: (i, 0)),
        ),
        compiler_params=pltpu.CompilerParams(
            dimension_semantics=("parallel",)),
    )(x2d, w, b, res2d)


def branch_chain(out_nhwc, w_stack, b_stack):
    N, H, W, C = out_nhwc.shape
    nums, _, width = w_stack.shape
    return pl.pallas_call(
        _branch_chain_kernel,
        out_shape=jax.ShapeDtypeStruct((N, H, W, C), out_nhwc.dtype),
        grid_spec=pltpu.PrefetchScalarGridSpec(
            num_scalar_prefetch=0,
            grid=(N,),
            in_specs=[
                pl.BlockSpec((1, H, W, C), lambda n: (n, 0, 0, 0)),
                pl.BlockSpec((nums, 9 * width, width), lambda n: (0, 0, 0)),
                pl.BlockSpec((nums, 1, width), lambda n: (0, 0, 0)),
            ],
            out_specs=pl.BlockSpec((1, H, W, C), lambda n: (n, 0, 0, 0)),
            scratch_shapes=[pltpu.VMEM((H + 2, W + 2, width), jnp.bfloat16)],
        ),
        compiler_params=pltpu.CompilerParams(
            dimension_semantics=("parallel",)),
    )(out_nhwc, w_stack, b_stack)


# ----------------------------------------------------------------------------
# Parameter construction (deterministic, PyTorch weight conventions,
# BatchNorm scale folded into the weights)
# ----------------------------------------------------------------------------
def _fold_bn(gamma, beta, mean, var, eps=1e-5):
    s = gamma / jnp.sqrt(var + eps)
    b = beta - mean * s
    return s.astype(jnp.float32), b.astype(jnp.float32)


def make_params(key, in_channels, out_channels, baseWidth, scale=4):
    width = int(math.floor(in_channels * (baseWidth / 64)))
    nums = 1 if scale == 1 else scale - 1
    keys = iter(jax.random.split(key, 64))

    def conv_w(shape, fan_in):
        return (jax.random.normal(next(keys), shape, jnp.float32)
                * (1.0 / math.sqrt(fan_in)))

    def bn_params(c):
        gamma = 1.0 + 0.1 * jax.random.normal(next(keys), (c,), jnp.float32)
        beta = 0.1 * jax.random.normal(next(keys), (c,), jnp.float32)
        mean = 0.1 * jax.random.normal(next(keys), (c,), jnp.float32)
        var = 1.0 + 0.1 * jax.random.uniform(next(keys), (c,), jnp.float32)
        return _fold_bn(gamma, beta, mean, var)

    p = {"width": width, "scale": scale, "nums": nums,
         "out_channels": out_channels}

    # conv1: (width*scale, in_channels, 1, 1) -> (in_channels, width*scale), scale folded
    w1_pt = conv_w((width * scale, in_channels, 1, 1), in_channels)
    s1, b1 = bn_params(width * scale)
    p["w1"] = (jnp.transpose(w1_pt[:, :, 0, 0], (1, 0)) * s1[None, :]).astype(jnp.bfloat16)
    p["b1"] = b1.reshape(1, -1)

    # 3x3 branch convs: (width, width, 3, 3) -> stacked (nums, 9*width, width), scale folded
    w_list, b_list = [], []
    for _ in range(nums):
        wt = conv_w((width, width, 3, 3), width * 9)
        # (co, ci, dy, dx) -> (dy, dx, ci, co) -> (9*ci, co)
        w_r = jnp.transpose(wt, (2, 3, 1, 0)).reshape(9 * width, width)
        s_i, b_i = bn_params(width)
        w_list.append((w_r * s_i[None, :]).astype(jnp.bfloat16))
        b_list.append(b_i.reshape(1, width))
    p["w3x3"] = jnp.stack(w_list, axis=0)                       # (nums, 9*width, width) bf16
    p["b3x3"] = jnp.stack(b_list, axis=0).astype(jnp.float32)   # (nums, 1, width) f32

    # conv3: (out_channels, width*scale, 1, 1) -> (width*scale, out_channels), scale folded
    w3_pt = conv_w((out_channels, width * scale, 1, 1), width * scale)
    s3, b3 = bn_params(out_channels)
    p["w3"] = (jnp.transpose(w3_pt[:, :, 0, 0], (1, 0)) * s3[None, :]).astype(jnp.bfloat16)
    p["b3"] = b3.reshape(1, -1)
    return p


# ----------------------------------------------------------------------------
# Forward pass (PyTorch-equivalent semantics, NCHW in / NCHW out)
# ----------------------------------------------------------------------------
def basicblock_forward(x_nchw, params):
    width, scale = params["width"], params["scale"]
    N, C, H, W = x_nchw.shape
    x = jnp.transpose(x_nchw, (0, 2, 3, 1)).astype(jnp.float32)       # NHWC
    x2d = x.reshape(N * H * W, C)

    # conv1 + bn1 + relu (M-tiled bf16 matmul)
    out2d = conv1x1_bias_relu(x2d.astype(jnp.bfloat16), params["w1"], params["b1"])
    out = out2d.reshape(N, H, W, width * scale)

    # fused hierarchical 3x3 branch chain -> concatenated (N, H, W, width*scale)
    cat = branch_chain(out, params["w3x3"], params["b3x3"])

    # conv3 + bn3 + residual + relu (residual added in f32; needs Cout == Cin)
    y2d = conv1x1_bias_add_relu(cat.reshape(N * H * W, width * scale),
                                params["w3"], params["b3"], x2d)
    y = y2d.reshape(N, H, W, params["out_channels"])
    return jnp.transpose(y, (0, 3, 1, 2))                             # back to NCHW


if __name__ == "__main__":
    in_channels = 16
    out_channels = 16          # must equal in_channels for the residual add
    baseWidth = 16             # -> width = floor(16 * 16/64) = 4
    scale = 4
    N, H, W = 2, 8, 8

    key = jax.random.PRNGKey(0)
    k_x, k_p = jax.random.split(key)
    x = jax.random.normal(k_x, (N, in_channels, H, W), jnp.float32)
    params = make_params(k_p, in_channels, out_channels, baseWidth, scale)

    out = basicblock_forward(x, params)
    out = jax.block_until_ready(out)
    assert out.shape == (N, out_channels, H, W)
    assert bool(jnp.all(out >= 0.0))          # final ReLU
    print("KERNEL_OK")
</pallas_src>

<mosaic_0001>
module attributes {stable_mosaic.version = 11 : i64} {
  func.func @_conv1x1_bias_relu_kernel(%arg0: i32, %arg1: memref<64x16xbf16, #tpu.memory_space<vmem>>, %arg2: memref<16x16xbf16, #tpu.memory_space<vmem>>, %arg3: memref<1x16xf32, #tpu.memory_space<vmem>>, %arg4: memref<64x16xbf16, #tpu.memory_space<vmem>>) attributes {dimension_semantics = [#tpu.dimension_semantics<parallel>], iteration_bounds = array<i64: 2>, scalar_prefetch = 0 : i64, scratch_operands = 0 : i64, tpu.core_type = #tpu.core_type<tc>, window_params = [{transform_indices = @transform_0, window_bounds = array<i64: 64, 16>}, {pipeline_mode = #tpu.pipeline_mode<synchronous>, transform_indices = @transform_1, window_bounds = array<i64: 16, 16>}, {pipeline_mode = #tpu.pipeline_mode<synchronous>, transform_indices = @transform_2, window_bounds = array<i64: 1, 16>}, {transform_indices = @transform_3, window_bounds = array<i64: 64, 16>}]} {
    %c0 = arith.constant 0 : index
    %c0_0 = arith.constant 0 : index
    %0 = vector.load %arg1[%c0, %c0_0] : memref<64x16xbf16, #tpu.memory_space<vmem>>, vector<64x16xbf16>
    %c0_1 = arith.constant 0 : index
    %c0_2 = arith.constant 0 : index
    %1 = vector.load %arg2[%c0_1, %c0_2] : memref<16x16xbf16, #tpu.memory_space<vmem>>, vector<16x16xbf16>
    %cst = arith.constant dense<0.000000e+00> : vector<64x16xf32>
    %2 = tpu.matmul %0, %1, %cst {dimension_numbers = #tpu.dot_dimension_numbers<[1], [0], [0], [1], [0, 0, 1, 1], [], []>} : vector<64x16xbf16>, vector<16x16xbf16>, vector<64x16xf32> -> vector<64x16xf32>
    %c0_3 = arith.constant 0 : index
    %c0_4 = arith.constant 0 : index
    %3 = vector.load %arg3[%c0_3, %c0_4] : memref<1x16xf32, #tpu.memory_space<vmem>>, vector<1x16xf32>
    %4 = vector.broadcast %3 : vector<1x16xf32> to vector<64x16xf32>
    %5 = arith.addf %2, %4 : vector<64x16xf32>
    %cst_5 = arith.constant 0.000000e+00 : f32
    %6 = vector.broadcast %cst_5 : f32 to vector<64x16xf32>
    %7 = arith.maximumf %5, %6 : vector<64x16xf32>
    %8 = arith.truncf %7 : vector<64x16xf32> to vector<64x16xbf16>
    %c0_6 = arith.constant 0 : index
    %c0_7 = arith.constant 0 : index
    %9 = vector.load %arg4[%c0_6, %c0_7] : memref<64x16xbf16, #tpu.memory_space<vmem>>, vector<64x16xbf16>
    tpu.vector_store %arg4[%c0_6, %c0_7], %8 {strides = array<i32>} : memref<64x16xbf16, #tpu.memory_space<vmem>>, vector<64x16xbf16>,
    return
  }
  func.func @transform_0(%arg0: i32) -> (i32, i32) {
    %c0_i32 = arith.constant 0 : i32
    %c0_i32_0 = arith.constant 0 : i32
    return %arg0, %c0_i32 : i32, i32
  }
  func.func @transform_1(%arg0: i32) -> (i32, i32) {
    %c0_i32 = arith.constant 0 : i32
    %c0_i32_0 = arith.constant 0 : i32
    %c0_i32_1 = arith.constant 0 : i32
    return %c0_i32, %c0_i32_0 : i32, i32
  }
  func.func @transform_2(%arg0: i32) -> (i32, i32) {
    %c0_i32 = arith.constant 0 : i32
    %c0_i32_0 = arith.constant 0 : i32
    %c0_i32_1 = arith.constant 0 : i32
    return %c0_i32, %c0_i32_0 : i32, i32
  }
  func.func @transform_3(%arg0: i32) -> (i32, i32) {
    %c0_i32 = arith.constant 0 : i32
    %c0_i32_0 = arith.constant 0 : i32
    return %arg0, %c0_i32 : i32, i32
  }
}

</mosaic_0001>

<bundles_post_ra>
// kernel: tpu_custom_call.1
= control target key start
LH: loop header
LB: loop body
LE: loop exit
PB: predicated region body
PF: predicated region fallthrough
CT: control target
= control target key end

     0   :  { %s496_s12 = smov 0   ;;  %s537_s0 = inlined_call_operand.vmem [shape: bf16[128,16], index: 0, kind: input, shape index: {}]   ;;  %s538_s1 = inlined_call_operand.vmem [shape: bf16[16,16], index: 1, kind: input, shape index: {}]   ;;  %s539_s2 = inlined_call_operand.vmem [shape: f32[1,16], index: 2, kind: input, shape index: {}]   ;;  %s540_s3 = inlined_call_operand.vmem [shape: bf16[128,16], index: 3, kind: output, shape index: {}]  }
   0x1 LB: > { %s401_s13 = sadd.s32 4294967295, %s474_s12   ;;  %p405_p0 = scmp.ge.s32.totalorder %s474_s12, 1  ;;  %s474_s12 = sphi %s496_s12, %s13_s12  }
   0x2   : > { %p138_p1 = scmp.lt.s32.totalorder %s474_s12, 3 }
   0x4   : > { %p139_p2 = pnand %p405_p0, %p138_p1 }
   0x5   : > { %s406_s16 = sshll.u32 (!%p139_p2), %s401_s13, 3 }
   0x6   : > { %142 = sbr.rel (%p139_p2) target bundleno = 222 (0xde), region = 32  ;;  %p163_p3 = scmp.lt.s32.totalorder (!%p139_p2), %s406_s16, 15 }
   0xb   : > { %v463_v0 = vld [vmem:[%s538_s1] sm:$0xff]   ;;  %s542_s16 = smov (!%p163_p3, %s406_s16), 15  ;;  %vm218_vm0 = vcmask 130048   ;;  %vm336_vm1 = vcmask 125952  }
   0xc   : > { %443 = vmatprep.subr.bf16.mxu0 %v463_v0  ;;  %453 = vmatprep.subr.bf16.mxu1 %v463_v0  ;;  %s407_s17 = sshll.u32 %s542_s16, 2  ;;  %v410_v5 = vld [vmem:[%s539_s2] ss:$0 sm:$0xff] }
   0xd   : > { %444 = vmatpush3.bf16.msra.mxu0 %v463_v0  ;;  %454 = vmatpush3.bf16.msra.mxu1 %v463_v0  ;;  %s166_s20 = scalar_lea.vmem %s537_s0, %s407_s17  ;;  %s516_s25 = scalar_lea.vmem %s540_s3, %s407_s17 }
   0xe   : > { %v464_v1 = vld [vmem:[%s166_s20] sm:$0xff]   ;;  %v465_v2 = vld [vmem:[%s166_s20 + $0x10] sm:$0xff]   ;;  %v466_v3 = vld [vmem:[%s166_s20 + $0x8] sm:$0xff]  }
   0xf   : > { %445 = vmatprep.mubr.msk.bf16.mxu0 %vm218_vm0, %v464_v1  ;;  %449 = vmatprep.mubr.msk.bf16.mxu1 %vm218_vm0, %v465_v2  ;;  %v467_v4 = vld [vmem:[%s166_s20 + $0x18] sm:$0xff]  }
  0x10   : > { %446 = vmatmul.mubr.msk.bf16.vlgmr.msra.gmra.mxu0 %vm218_vm0, %v466_v3  ;;  %450 = vmatmul.mubr.msk.bf16.vlgmr.msra.gmra.mxu1 %vm218_vm0, %v467_v4 }
  0xd0   : > { %v447_v6 = vpop.f32.mrf.mxu0  ;;  %v451_v8 = vpop.f32.mrf.mxu1 }
  0xd1   : > { %v274_v7 = vadd.f32 %v447_v6, %v410_v5  ;;  %v290_v9 = vadd.f32 %v451_v8, %v410_v5 }
  0xd2   : > { %v265_v10 = vpop.f32.mrf.mxu0  ;;  %v281_v13 = vpop.f32.mrf.mxu1 }
  0xd3   : > { %v298_v11 = vmax.f32 %v274_v7, 0.0  ;;  %v266_v12 = vadd.f32 %v410_v5, %v265_v10  ;;  %v302_v14 = vmax.f32 %v290_v9, 0.0  ;;  %v282_v15 = vadd.f32 %v410_v5, %v281_v13 }
  0xd4   : > { %v448_v16 = vpop.f32.mrf.mxu0  ;;  %v452_v20 = vpop.f32.mrf.mxu1 }
  0xd5   : > { %v432_v17 = vpack.c.bf16 %v298_v11, %v298_v11  ;;  %v296_v18 = vmax.f32 %v266_v12, 0.0  ;;  %v277_v19 = vadd.f32 %v448_v16, %v410_v5  ;;  %v436_v21 = vpack.c.bf16 %v302_v14, %v302_v14 }
  0xd6   : > { %v300_v22 = vmax.f32 %v282_v15, 0.0  ;;  %v293_v23 = vadd.f32 %v452_v20, %v410_v5  ;;  %v268_v24 = vpop.f32.mrf.mxu0  ;;  %v284_v28 = vpop.f32.mrf.mxu1 }
  0xd7   : > { %339 = vst.msk [vmem:[%s516_s25 + $0x8] sm:$0xf] %vm336_vm1, %v432_v17  ;;  %v430_v25 = vpack.c.bf16 %v296_v18, %v296_v18  ;;  %v299_v26 = vmax.f32 %v277_v19, 0.0  ;;  %v269_v27 = vadd.f32 %v410_v5, %v268_v24  ;;  %343 = vst.msk [vmem:[%s516_s25 + $0x18] sm:$0xf] %vm336_vm1, %v436_v21  ;;  %v285_v31 = vadd.f32 %v410_v5, %v284_v28 }
  0xd8   : > { %v434_v29 = vpack.c.bf16 %v300_v22, %v300_v22  ;;  %v303_v30 = vmax.f32 %v293_v23, 0.0 }
  0xd9   : > { %337 = vst.msk [vmem:[%s516_s25] sm:$0xf] %vm336_vm1, %v430_v25  ;;  %v433_v32 = vpack.c.bf16 %v299_v26, %v299_v26  ;;  %v297_v33 = vmax.f32 %v269_v27, 0.0  ;;  %v301_v35 = vmax.f32 %v285_v31, 0.0 }
  0xda   : > { %341 = vst.msk [vmem:[%s516_s25 + $0x10] sm:$0xf] %vm336_vm1, %v434_v29  ;;  %v437_v34 = vpack.c.bf16 %v303_v30, %v303_v30 }
  0xdb   : > { %340 = vst.msk [vmem:[%s516_s25 + $0xc] sm:$0xf] %vm336_vm1, %v433_v32  ;;  %v431_v36 = vpack.c.bf16 %v297_v33, %v297_v33  ;;  %v435_v37 = vpack.c.bf16 %v301_v35, %v301_v35 }
  0xdc   : > { %344 = vst.msk [vmem:[%s516_s25 + $0x1c] sm:$0xf] %vm336_vm1, %v437_v34 }
  0xdd   : > { %338 = vst.msk [vmem:[%s516_s25 + $0x4] sm:$0xf] %vm336_vm1, %v431_v36  ;;  %342 = vst.msk [vmem:[%s516_s25 + $0x14] sm:$0xf] %vm336_vm1, %v435_v37 }
  0xde PF: > { %s13_s12 = sadd.s32 1, %s474_s12  }
  0xdf   : > { %p10_p4 = scmp.ge.s32.totalorder %s13_s12, 4  }
  0xe1   :  { %12 = sbr.rel (!%p10_p4) target bundleno = 1 (0x1), region = 62 }

</bundles_post_ra>
